<compile_context>
chip_gen: v6e
topology: v6e:2x2x1
jax: 0.10.0
libtpu: 0.0.40
codegen_flags: <defaults>
</compile_context>

<pallas_src>
import jax
import jax.numpy as jnp
from jax.experimental import pallas as pl
from jax.experimental.pallas import tpu as pltpu

NEURONS = 64
LANE = 128          # TPU lane width; batch tiles live on the lane axis
MAX_TILE_B = 2048   # max batch columns per grid step


def e1net_kernel(xt1_ref, p1_ref, p2_ref, p3_ref, p4_ref, o_ref):
    """Transposed (batch-on-lanes) forward pass.

    xt1_ref : (3, TILE_B)     rows = [x ; t ; 1]
    p1_ref  : (64, 3)         [w1_x | w1_t | b1]
    p2_ref  : (64, 65)        [W2 | b2]
    p3_ref  : (64, 65)        [W3 | b3]
    p4_ref  : (1, 65)         [W4 | b4]
    o_ref   : (1, TILE_B)
    """
    xt1 = xt1_ref[...]                                            # (3, TILE_B)

    # Layer 1: bias folded into the matmul via the ones row -> one MXU op,
    # no cross-lane/sublane broadcast chain on the VPU/XLU.
    h = jnp.tanh(jnp.dot(p1_ref[...], xt1,
                         preferred_element_type=jnp.float32))     # (64, TILE_B)

    w2 = p2_ref[:, 0:NEURONS]                                     # (64, 64)
    b2 = p2_ref[:, NEURONS:NEURONS + 1]                           # (64, 1)
    h = jnp.tanh(jnp.dot(w2, h, preferred_element_type=jnp.float32) + b2)

    w3 = p3_ref[:, 0:NEURONS]
    b3 = p3_ref[:, NEURONS:NEURONS + 1]
    h = jnp.tanh(jnp.dot(w3, h, preferred_element_type=jnp.float32) + b3)

    w4 = p4_ref[:, 0:NEURONS]                                     # (1, 64)
    b4 = p4_ref[:, NEURONS:NEURONS + 1]                           # (1, 1)
    out = jnp.dot(w4, h, preferred_element_type=jnp.float32) + b4   # (1, TILE_B)
    o_ref[...] = out.astype(o_ref.dtype)                          # lane-dense store


def _pack_params(params):
    """Fold each bias into its (out, in) weight as an extra column."""
    (w1, b1), (w2, b2), (w3, b3), (w4, b4) = params
    p1 = jnp.concatenate([w1, b1[:, None]], axis=1)  # (64, 3)
    p2 = jnp.concatenate([w2, b2[:, None]], axis=1)  # (64, 65)
    p3 = jnp.concatenate([w3, b3[:, None]], axis=1)  # (64, 65)
    p4 = jnp.concatenate([w4, b4[:, None]], axis=1)  # (1, 65)
    return p1, p2, p3, p4


@jax.jit
def e1net_forward(x, t, params):
    """x, t: (N, 1) float32  ->  (N, 1) float32."""
    n = x.shape[0]
    # Lane-dense tiling: batch goes on the 128-wide lane axis; pad as needed.
    tile_b = min(MAX_TILE_B, max(LANE, pl.cdiv(n, LANE) * LANE))
    n_pad = pl.cdiv(n, tile_b) * tile_b
    grid = (n_pad // tile_b,)

    ones = jnp.ones_like(x)
    xt1 = jnp.concatenate([x, t, ones], axis=1).T        # (3, N): [x; t; 1]
    xt1 = jnp.pad(xt1, ((0, 0), (0, n_pad - n)))         # (3, n_pad)

    p1, p2, p3, p4 = _pack_params(params)

    full = lambda i: (0, 0)   # weights: same (whole) block every step -> revisited
    out = pl.pallas_call(
        e1net_kernel,
        out_shape=jax.ShapeDtypeStruct((1, n_pad), jnp.float32),
        grid_spec=pltpu.PrefetchScalarGridSpec(
            num_scalar_prefetch=0,
            grid=grid,
            in_specs=[
                pl.BlockSpec((3, tile_b), lambda i: (0, i)),      # [x; t; 1]
                pl.BlockSpec((NEURONS, 3), full),                 # [w1 | b1]
                pl.BlockSpec((NEURONS, NEURONS + 1), full),       # [W2 | b2]
                pl.BlockSpec((NEURONS, NEURONS + 1), full),       # [W3 | b3]
                pl.BlockSpec((1, NEURONS + 1), full),             # [W4 | b4]
            ],
            out_specs=pl.BlockSpec((1, tile_b), lambda i: (0, i)),
        ),
        compiler_params=pltpu.CompilerParams(
            dimension_semantics=("parallel",),   # batch axis splits across TCs on v7x
        ),
    )(xt1, p1, p2, p3, p4)

    return out[:, :n].T                                   # back to (N, 1)


# ---------------- parameter init (PyTorch (out, in) convention) ----------------
def xavier_uniform(key, fan_out, fan_in):
    bound = (6.0 / (fan_in + fan_out)) ** 0.5
    return jax.random.uniform(key, (fan_out, fan_in), jnp.float32, -bound, bound)


def linear_bias(key, fan_in, fan_out):
    # PyTorch nn.Linear default bias init: U(-1/sqrt(fan_in), 1/sqrt(fan_in))
    bound = 1.0 / (fan_in ** 0.5)
    return jax.random.uniform(key, (fan_out,), jnp.float32, -bound, bound)


def init_params(key):
    ks = jax.random.split(key, 8)
    w1 = xavier_uniform(ks[0], NEURONS, 2)
    b1 = linear_bias(ks[1], 2, NEURONS)
    w2 = xavier_uniform(ks[2], NEURONS, NEURONS)
    b2 = linear_bias(ks[3], NEURONS, NEURONS)
    w3 = xavier_uniform(ks[4], NEURONS, NEURONS)
    b3 = linear_bias(ks[5], NEURONS, NEURONS)
    w4 = xavier_uniform(ks[6], 1, NEURONS)
    b4 = linear_bias(ks[7], NEURONS, 1)
    return ((w1, b1), (w2, b2), (w3, b3), (w4, b4))


def e1net_ref(x, t, params):
    (w1, b1), (w2, b2), (w3, b3), (w4, b4) = params
    inp = jnp.concatenate([x, t], axis=1)
    h1 = jnp.tanh(inp @ w1.T + b1)
    h2 = jnp.tanh(h1 @ w2.T + b2)
    h3 = jnp.tanh(h2 @ w3.T + b3)
    return h3 @ w4.T + b4


if __name__ == "__main__":
    key = jax.random.PRNGKey(0)
    kp, kd = jax.random.split(key)
    params = init_params(kp)

    # Small shapes; 300 exercises the non-multiple-of-tile padding path.
    for n in (16, 300):
        kx, kt, kd = jax.random.split(kd, 3)
        x = jax.random.uniform(kx, (n, 1), jnp.float32)
        t = jax.random.uniform(kt, (n, 1), jnp.float32)

        out = jax.block_until_ready(e1net_forward(x, t, params))
        ref = e1net_ref(x, t, params)

        assert out.shape == (n, 1)
        assert jnp.allclose(out, ref, atol=2e-5, rtol=2e-5), f"mismatch vs reference at N={n}"

    print("KERNEL_OK")
</pallas_src>

<mosaic_0001>
module attributes {stable_mosaic.version = 11 : i64} {
  func.func @e1net_kernel(%arg0: i32, %arg1: memref<3x128xf32, #tpu.memory_space<vmem>>, %arg2: memref<64x3xf32, #tpu.memory_space<vmem>>, %arg3: memref<64x65xf32, #tpu.memory_space<vmem>>, %arg4: memref<64x65xf32, #tpu.memory_space<vmem>>, %arg5: memref<1x65xf32, #tpu.memory_space<vmem>>, %arg6: memref<1x128xf32, #tpu.memory_space<vmem>>) attributes {dimension_semantics = [#tpu.dimension_semantics<parallel>], iteration_bounds = array<i64: 1>, scalar_prefetch = 0 : i64, scratch_operands = 0 : i64, tpu.core_type = #tpu.core_type<tc>, window_params = [{transform_indices = @transform_0, window_bounds = array<i64: 3, 128>}, {pipeline_mode = #tpu.pipeline_mode<synchronous>, transform_indices = @transform_1, window_bounds = array<i64: 64, 3>}, {pipeline_mode = #tpu.pipeline_mode<synchronous>, transform_indices = @transform_2, window_bounds = array<i64: 64, 65>}, {pipeline_mode = #tpu.pipeline_mode<synchronous>, transform_indices = @transform_3, window_bounds = array<i64: 64, 65>}, {pipeline_mode = #tpu.pipeline_mode<synchronous>, transform_indices = @transform_4, window_bounds = array<i64: 1, 65>}, {transform_indices = @transform_5, window_bounds = array<i64: 1, 128>}]} {
    %c0 = arith.constant 0 : index
    %c0_0 = arith.constant 0 : index
    %0 = vector.load %arg1[%c0, %c0_0] : memref<3x128xf32, #tpu.memory_space<vmem>>, vector<3x128xf32>
    %c0_1 = arith.constant 0 : index
    %c0_2 = arith.constant 0 : index
    %1 = vector.load %arg2[%c0_1, %c0_2] : memref<64x3xf32, #tpu.memory_space<vmem>>, vector<64x3xf32>
    %cst = arith.constant dense<0.000000e+00> : vector<64x128xf32>
    %2 = tpu.matmul %1, %0, %cst {dimension_numbers = #tpu.dot_dimension_numbers<[1], [0], [0], [1], [0, 0, 1, 1], [], []>} : vector<64x3xf32>, vector<3x128xf32>, vector<64x128xf32> -> vector<64x128xf32>
    %3 = math.tanh %2 : vector<64x128xf32>
    %c0_3 = arith.constant 0 : index
    %c0_4 = arith.constant 0 : index
    %4 = vector.load %arg3[%c0_3, %c0_4] : memref<64x65xf32, #tpu.memory_space<vmem>>, vector<64x64xf32>
    %c0_5 = arith.constant 0 : index
    %c64 = arith.constant 64 : index
    %5 = vector.load %arg3[%c0_5, %c64] : memref<64x65xf32, #tpu.memory_space<vmem>>, vector<64x1xf32>
    %cst_6 = arith.constant dense<0.000000e+00> : vector<64x128xf32>
    %6 = tpu.matmul %4, %3, %cst_6 {dimension_numbers = #tpu.dot_dimension_numbers<[1], [0], [0], [1], [0, 0, 1, 1], [], []>} : vector<64x64xf32>, vector<64x128xf32>, vector<64x128xf32> -> vector<64x128xf32>
    %7 = vector.broadcast %5 : vector<64x1xf32> to vector<64x128xf32>
    %8 = arith.addf %6, %7 : vector<64x128xf32>
    %9 = math.tanh %8 : vector<64x128xf32>
    %c0_7 = arith.constant 0 : index
    %c0_8 = arith.constant 0 : index
    %10 = vector.load %arg4[%c0_7, %c0_8] : memref<64x65xf32, #tpu.memory_space<vmem>>, vector<64x64xf32>
    %c0_9 = arith.constant 0 : index
    %c64_10 = arith.constant 64 : index
    %11 = vector.load %arg4[%c0_9, %c64_10] : memref<64x65xf32, #tpu.memory_space<vmem>>, vector<64x1xf32>
    %cst_11 = arith.constant dense<0.000000e+00> : vector<64x128xf32>
    %12 = tpu.matmul %10, %9, %cst_11 {dimension_numbers = #tpu.dot_dimension_numbers<[1], [0], [0], [1], [0, 0, 1, 1], [], []>} : vector<64x64xf32>, vector<64x128xf32>, vector<64x128xf32> -> vector<64x128xf32>
    %13 = vector.broadcast %11 : vector<64x1xf32> to vector<64x128xf32>
    %14 = arith.addf %12, %13 : vector<64x128xf32>
    %15 = math.tanh %14 : vector<64x128xf32>
    %c0_12 = arith.constant 0 : index
    %c0_13 = arith.constant 0 : index
    %16 = vector.load %arg5[%c0_12, %c0_13] : memref<1x65xf32, #tpu.memory_space<vmem>>, vector<1x64xf32>
    %c0_14 = arith.constant 0 : index
    %c64_15 = arith.constant 64 : index
    %17 = vector.load %arg5[%c0_14, %c64_15] : memref<1x65xf32, #tpu.memory_space<vmem>>, vector<1x1xf32>
    %cst_16 = arith.constant dense<0.000000e+00> : vector<1x128xf32>
    %18 = tpu.matmul %16, %15, %cst_16 {dimension_numbers = #tpu.dot_dimension_numbers<[1], [0], [0], [1], [0, 0, 1, 1], [], []>} : vector<1x64xf32>, vector<64x128xf32>, vector<1x128xf32> -> vector<1x128xf32>
    %19 = vector.broadcast %17 : vector<1x1xf32> to vector<1x128xf32>
    %20 = arith.addf %18, %19 : vector<1x128xf32>
    %c0_17 = arith.constant 0 : index
    %c0_18 = arith.constant 0 : index
    %21 = vector.load %arg6[%c0_17, %c0_18] : memref<1x128xf32, #tpu.memory_space<vmem>>, vector<1x128xf32>
    tpu.vector_store %arg6[%c0_17, %c0_18], %20 {strides = array<i32>} : memref<1x128xf32, #tpu.memory_space<vmem>>, vector<1x128xf32>,
    return
  }
  func.func @transform_0(%arg0: i32) -> (i32, i32) {
    %c0_i32 = arith.constant 0 : i32
    %c0_i32_0 = arith.constant 0 : i32
    return %c0_i32, %arg0 : i32, i32
  }
  func.func @transform_1(%arg0: i32) -> (i32, i32) {
    %c0_i32 = arith.constant 0 : i32
    %c0_i32_0 = arith.constant 0 : i32
    %c0_i32_1 = arith.constant 0 : i32
    return %c0_i32, %c0_i32_0 : i32, i32
  }
  func.func @transform_2(%arg0: i32) -> (i32, i32) {
    %c0_i32 = arith.constant 0 : i32
    %c0_i32_0 = arith.constant 0 : i32
    %c0_i32_1 = arith.constant 0 : i32
    return %c0_i32, %c0_i32_0 : i32, i32
  }
  func.func @transform_3(%arg0: i32) -> (i32, i32) {
    %c0_i32 = arith.constant 0 : i32
    %c0_i32_0 = arith.constant 0 : i32
    %c0_i32_1 = arith.constant 0 : i32
    return %c0_i32, %c0_i32_0 : i32, i32
  }
  func.func @transform_4(%arg0: i32) -> (i32, i32) {
    %c0_i32 = arith.constant 0 : i32
    %c0_i32_0 = arith.constant 0 : i32
    %c0_i32_1 = arith.constant 0 : i32
    return %c0_i32, %c0_i32_0 : i32, i32
  }
  func.func @transform_5(%arg0: i32) -> (i32, i32) {
    %c0_i32 = arith.constant 0 : i32
    %c0_i32_0 = arith.constant 0 : i32
    return %c0_i32, %arg0 : i32, i32
  }
}

</mosaic_0001>

<bundles_post_ra>
// kernel: e1net_forward.1
= control target key start
LH: loop header
LB: loop body
LE: loop exit
PB: predicated region body
PF: predicated region fallthrough
CT: control target
= control target key end

     0   :  { %vm54_vm0 = vcmask 1042432   ;;  %vm29_vm1 = vcmask 23552   ;;  %vm219_vm2 = vcmask 523264   ;;  %v831_v12 = vmov 64   ;;  %s1026_s0 = inlined_call_operand.vmem [shape: f32[3,128], index: 0, kind: input, shape index: {}]   ;;  %s1027_s1 = inlined_call_operand.vmem [shape: f32[64,3], index: 1, kind: input, shape index: {}]   ;;  %s1028_s2 = inlined_call_operand.vmem [shape: f32[64,65], index: 2, kind: input, shape index: {}]   ;;  %s1029_s3 = inlined_call_operand.vmem [shape: f32[64,65], index: 3, kind: input, shape index: {}]   ;;  %s1030_s4 = inlined_call_operand.vmem [shape: f32[1,65], index: 4, kind: input, shape index: {}]   ;;  %s1031_s5 = inlined_call_operand.vmem [shape: f32[1,128], index: 5, kind: output, shape index: {}]  }
   0x1   :  { %v20_v0 = vld [vmem:[%s1026_s0] sm:$0x7]  ;;  %v22_v2 = vld [vmem:[%s1027_s1 + $0x8] sm:$0xff]  ;;  %v23_v3 = vld [vmem:[%s1027_s1 + $0x10] sm:$0xff]  ;;  %781 = vset.pattern.permute.xlu0 %v831_v12  ;;  %782 = vset.pattern.permute.xlu1 %v831_v12  ;;  %vm833_vm3 = vmmov 0  }
   0x2   :  { %v21_v1 = vld [vmem:[%s1027_s1] sm:$0xff]  ;;  %689 = vmatprep.subr.msk.mxu0 %vm54_vm0, %v20_v0  ;;  %v24_v4 = vld [vmem:[%s1027_s1 + $0x18] sm:$0xff]  ;;  %v26_v6 = vld [vmem:[%s1027_s1 + $0x28] sm:$0xff] }
   0x3   :  { %691 = vmatprep.mubr.msk.f32.mxu0 %vm29_vm1, %v21_v1  ;;  %690 = vmatpush3.msk.msra.mxu0 %vm54_vm0, %v20_v0  ;;  %v25_v5 = vld [vmem:[%s1027_s1 + $0x20] sm:$0xff]  ;;  %v27_v7 = vld [vmem:[%s1027_s1 + $0x30] sm:$0xff]  ;;  %v28_v8 = vld [vmem:[%s1027_s1 + $0x38] sm:$0xff] }
   0x4   :  { %692 = vmatmul.mubr.msk.f32.vlgmr.msra.gmra.mxu0 %vm29_vm1, %v22_v2  ;;  %v171_v9 = vld [vmem:[%s1028_s2] sm:$0xff]  ;;  %v906_v10 = vld [vmem:[%s1028_s2 + $0x28] sm:$0xff]  ;;  %v911_v11 = vld [vmem:[%s1028_s2 + $0x38] sm:$0xff] }
   0x5   :  { %694 = vmatprep.mubr.msk.f32.mxu0 %vm29_vm1, %v23_v3  ;;  %719 = vmatprep.mubr.msk.f32.mxu1 %vm219_vm2, %v171_v9  ;;  %v349_v13 = vld [vmem:[%s1029_s3] sm:$0xff]  ;;  %v927_v15 = vld [vmem:[%s1028_s2 + $0x30] sm:$0xff]  ;;  %v939_v17 = vld [vmem:[%s1028_s2 + $0x18] sm:$0xff] }
   0x6   :  { %216 = vperm.xlu0 %781, %v911_v11   ;;  %206 = vperm.xlu1 %782, %v906_v10   ;;  %v922_v14 = vld [vmem:[%s1028_s2 + $0x20] sm:$0xff]  ;;  %v934_v16 = vld [vmem:[%s1028_s2 + $0x10] sm:$0xff]  ;;  %v172_v18 = vld [vmem:[%s1028_s2 + $0x8] sm:$0xff] }
   0x7   :  { %v949_v19 = vld [vmem:[%s1029_s3 + $0x38] sm:$0xff]  ;;  %v954_v20 = vld [vmem:[%s1029_s3 + $0x30] sm:$0xff]  ;;  %v961_v21 = vld [vmem:[%s1029_s3 + $0x28] sm:$0xff] }
   0x8   :  { %695 = vmatmul.mubr.msk.f32.gmra.mxu0 %vm29_vm1, %v24_v4  ;;  %v966_v22 = vld [vmem:[%s1029_s3 + $0x20] sm:$0xff]  ;;  %v973_v23 = vld [vmem:[%s1029_s3 + $0x18] sm:$0xff]  ;;  %v978_v24 = vld [vmem:[%s1029_s3 + $0x10] sm:$0xff] }
   0x9   :  { %697 = vmatprep.mubr.msk.f32.mxu0 %vm29_vm1, %v25_v5  ;;  %v985_v25 = vld [vmem:[%s1029_s3 + $0x8] sm:$0xff]  ;;  %v991_v26 = vld [vmem:[%s1030_s4] sm:$0x1] }
   0xa   :  { %211 = vperm.xlu0 %781, %v927_v15   ;;  %201 = vperm.xlu1 %782, %v922_v14  }
   0xc   :  { %698 = vmatmul.mubr.msk.f32.gmra.mxu0 %vm29_vm1, %v26_v6 }
   0xd   :  { %700 = vmatprep.mubr.msk.f32.mxu0 %vm29_vm1, %v27_v7 }
   0xe   :  { %196 = vperm.xlu0 %781, %v939_v17   ;;  %191 = vperm.xlu1 %782, %v934_v16  }
  0x10   :  { %701 = vmatmul.mubr.msk.f32.gmra.mxu0 %vm29_vm1, %v28_v8 }
  0x11   :  { %747 = vmatprep.mubr.msk.f32.mxu0 %vm219_vm2, %v349_v13 }
  0x12   :  { %186 = vperm.xlu0 %781, %v172_v18   ;;  %181 = vperm.xlu1 %782, %v171_v9  }
  0x16   :  { %394 = vperm.xlu0 %781, %v949_v19   ;;  %389 = vperm.xlu1 %782, %v954_v20  }
  0x1a   :  { %384 = vperm.xlu0 %781, %v961_v21   ;;  %379 = vperm.xlu1 %782, %v966_v22  }
  0x1e   :  { %374 = vperm.xlu0 %781, %v973_v23   ;;  %369 = vperm.xlu1 %782, %v978_v24  }
  0x22   :  { %364 = vperm.xlu0 %781, %v985_v25   ;;  %359 = vperm.xlu1 %782, %v349_v13  }
  0x26   :  { %529 = vperm.xlu0 %781, %v991_v26  }
  0x81   :  { %v217_v45 = vpop.permute.xlu0 %216  ;;  %v207_v47 = vpop.permute.xlu1 %206 }
  0x85   :  { %v212_v50 = vpop.permute.xlu0 %211  ;;  %v202_v52 = vpop.permute.xlu1 %201 }
  0x89   :  { %v197_v58 = vpop.permute.xlu0 %196  ;;  %v192_v60 = vpop.permute.xlu1 %191 }
  0x8d   :  { %v187_v63 = vpop.permute.xlu0 %186  ;;  %v182_v1 = vpop.permute.xlu1 %181 }
  0xc4   :  { %v693_v27 = vpop.f32.mrf.mxu0 }
  0xc6   :  { %v124_v28 = vpop.f32.mrf.mxu0 }
  0xc8   :  { %v696_v29 = vpop.f32.mrf.mxu0 }
  0xca   :  { %v134_v30 = vpop.f32.mrf.mxu0 }
  0xcc   :  { %v699_v31 = vpop.f32.mrf.mxu0 }
  0xce   :  { %v144_v32 = vpop.f32.mrf.mxu0 }
  0xd0   :  { %v702_v33 = vpop.f32.mrf.mxu0 }
  0xd1   :  { %783 = vtanh.f32 %v702_v33 }
  0xd2   :  { %v154_v34 = vpop.f32.mrf.mxu0 }
  0xd3   :  { %785 = vtanh.f32 %v154_v34 }
  0xd4   :  { %787 = vtanh.f32 %v699_v31 }
  0xd5   :  { %789 = vtanh.f32 %v144_v32 }
  0xd6   :  { %791 = vtanh.f32 %v696_v29 }
  0xd7   :  { %793 = vtanh.f32 %v134_v30 }
  0xd8   :  { %795 = vtanh.f32 %v693_v27 }
  0xd9   :  { %797 = vtanh.f32 %v124_v28 }
  0xde   :  { %v784_v35 = vpop.eup %783 }
  0xdf   :  { %703 = vmatprep.subr.mxu1 %v784_v35 }
  0xe0   :  { %v786_v36 = vpop.eup %785  ;;  %704 = vmatpush3.msra.mxu1 %v784_v35 }
  0xe1   :  { %705 = vmatprep.subr.mxu1 %v786_v36  ;;  %v788_v37 = vpop.eup %787 }
  0xe2   :  { %706 = vmatpush3.msra.mxu1 %v786_v36  ;;  %v790_v38 = vpop.eup %789 }
  0xe3   :  { %707 = vmatprep.subr.mxu1 %v788_v37  ;;  %v792_v39 = vpop.eup %791 }
  0xe4   :  { %708 = vmatpush3.msra.mxu1 %v788_v37  ;;  %v794_v40 = vpop.eup %793 }
  0xe5   :  { %709 = vmatprep.subr.mxu1 %v790_v38  ;;  %v796_v41 = vpop.eup %795 }
  0xe6   :  { %710 = vmatpush3.msra.mxu1 %v790_v38  ;;  %v798_v42 = vpop.eup %797 }
  0xe7   :  { %711 = vmatprep.subr.mxu1 %v792_v39 }
  0xe8   :  { %712 = vmatpush3.msra.mxu1 %v792_v39 }
  0xe9   :  { %713 = vmatprep.subr.mxu1 %v794_v40 }
  0xea   :  { %714 = vmatpush3.msra.mxu1 %v794_v40 }
  0xeb   :  { %715 = vmatprep.subr.mxu1 %v796_v41 }
  0xec   :  { %716 = vmatpush3.msra.mxu1 %v796_v41 }
  0xed   :  { %717 = vmatprep.subr.mxu1 %v798_v42 }
  0xee   :  { %718 = vmatpush3.msra.mxu1 %v798_v42 }
  0xef   :  { %720 = vmatmul.mubr.msk.f32.vlgmr.msra.gmra.mxu1 %vm219_vm2, %v172_v18 }
  0xf0   :  { %722 = vmatprep.mubr.msk.f32.mxu1 %vm219_vm2, %v934_v16  ;;  %v390_v16 = vpop.permute.xlu1 %389 }
  0xf3   :  { %723 = vmatmul.mubr.msk.f32.gmra.mxu1 %vm219_vm2, %v939_v17 }
  0xf4   :  { %725 = vmatprep.mubr.msk.f32.mxu1 %vm219_vm2, %v922_v14  ;;  %v395_v14 = vpop.permute.xlu0 %394 }
  0xf7   :  { %726 = vmatmul.mubr.msk.f32.gmra.mxu1 %vm219_vm2, %v906_v10 }
  0xf8   :  { %728 = vmatprep.mubr.msk.f32.mxu1 %vm219_vm2, %v927_v15 }
  0xfb   :  { %729 = vmatmul.mubr.msk.f32.gmra.mxu1 %vm219_vm2, %v911_v11  ;;  %v832_v11 = vmov 0.0  }
  0xfc   :  { %759 = vmatprep.subr.mxu1 %v832_v11  ;;  %775 = vmatprep.mubr.msk.f32.mxu1 %vm833_vm3, %v832_v11 }
 0x1af   :  { %v721_v43 = vpop.f32.mrf.mxu1 }
 0x1b0   :  { %v308_v0 = vadd.f32 %v721_v43, %v187_v63 }
 0x1b1   :  { %v302_v44 = vpop.f32.mrf.mxu1 }
 0x1b2   :  { %v303_v2 = vadd.f32 %v302_v44, %v182_v1 }
 0x1b3   :  { %v724_v46 = vpop.f32.mrf.mxu1 }
 0x1b4   :  { %v318_v61 = vadd.f32 %v724_v46, %v197_v58 }
 0x1b5   :  { %v312_v48 = vpop.f32.mrf.mxu1 }
 0x1b6   :  { %v313_v62 = vadd.f32 %v312_v48, %v192_v60 }
 0x1b7   :  { %v727_v49 = vpop.f32.mrf.mxu1 }
 0x1b8   :  { %v328_v56 = vadd.f32 %v727_v49, %v207_v47 }
 0x1b9   :  { %v322_v51 = vpop.f32.mrf.mxu1 }
 0x1ba   :  { %v323_v59 = vadd.f32 %v322_v51, %v202_v52 }
 0x1bb   :  { %v730_v53 = vpop.f32.mrf.mxu1 }
 0x1bc   :  { %v338_v54 = vadd.f32 %v730_v53, %v217_v45  ;;  %v532_v45 = vlaneseq }
 0x1bd   :  { %v332_v55 = vpop.f32.mrf.mxu1 }
 0x1be   :  { %799 = vtanh.f32 %v338_v54  ;;  %v333_v57 = vadd.f32 %v332_v55, %v212_v50  ;;  %v533_v46 = vshrl.u32 %v532_v45, 7 }
 0x1c0   :  { %801 = vtanh.f32 %v333_v57  ;;  %v534_v47 = vsub.s32 0, %v533_v46 }
 0x1c1   :  { %803 = vtanh.f32 %v328_v56 }
 0x1c2   :  { %805 = vtanh.f32 %v323_v59 }
 0x1c3   :  { %807 = vtanh.f32 %v318_v61 }
 0x1c4   :  { %809 = vtanh.f32 %v313_v62 }
 0x1c5   :  { %811 = vtanh.f32 %v308_v0 }
 0x1c6   :  { %813 = vtanh.f32 %v303_v2 }
 0x1cb   :  { %v800_v3 = vpop.eup %799 }
 0x1cc   :  { %731 = vmatprep.subr.mxu0 %v800_v3 }
 0x1cd   :  { %v802_v4 = vpop.eup %801  ;;  %732 = vmatpush3.msra.mxu0 %v800_v3 }
 0x1ce   :  { %733 = vmatprep.subr.mxu0 %v802_v4  ;;  %v804_v5 = vpop.eup %803 }
 0x1cf   :  { %734 = vmatpush3.msra.mxu0 %v802_v4  ;;  %v806_v6 = vpop.eup %805 }
 0x1d0   :  { %735 = vmatprep.subr.mxu0 %v804_v5  ;;  %v808_v7 = vpop.eup %807 }
 0x1d1   :  { %736 = vmatpush3.msra.mxu0 %v804_v5  ;;  %v810_v8 = vpop.eup %809 }
 0x1d2   :  { %737 = vmatprep.subr.mxu0 %v806_v6  ;;  %v812_v9 = vpop.eup %811 }
 0x1d3   :  { %738 = vmatpush3.msra.mxu0 %v806_v6  ;;  %v814_v10 = vpop.eup %813 }
 0x1d4   :  { %739 = vmatprep.subr.mxu0 %v808_v7 }
 0x1d5   :  { %740 = vmatpush3.msra.mxu0 %v808_v7 }
 0x1d6   :  { %741 = vmatprep.subr.mxu0 %v810_v8 }
 0x1d7   :  { %742 = vmatpush3.msra.mxu0 %v810_v8 }
 0x1d8   :  { %743 = vmatprep.subr.mxu0 %v812_v9 }
 0x1d9   :  { %744 = vmatpush3.msra.mxu0 %v812_v9 }
 0x1da   :  { %745 = vmatprep.subr.mxu0 %v814_v10 }
 0x1db   :  { %746 = vmatpush3.msra.mxu0 %v814_v10 }
 0x1dc   :  { %748 = vmatmul.mubr.msk.f32.vlgmr.msra.gmra.mxu0 %vm219_vm2, %v985_v25 }
 0x1dd   :  { %750 = vmatprep.mubr.msk.f32.mxu0 %vm219_vm2, %v978_v24 }
 0x1e0   :  { %751 = vmatmul.mubr.msk.f32.gmra.mxu0 %vm219_vm2, %v973_v23 }
 0x1e1   :  { %753 = vmatprep.mubr.msk.f32.mxu0 %vm219_vm2, %v966_v22  ;;  %v385_v22 = vpop.permute.xlu0 %384 }
 0x1e4   :  { %754 = vmatmul.mubr.msk.f32.gmra.mxu0 %vm219_vm2, %v961_v21  ;;  %v380_v21 = vpop.permute.xlu1 %379 }
 0x1e5   :  { %756 = vmatprep.mubr.msk.f32.mxu0 %vm219_vm2, %v954_v20  ;;  %v375_v28 = vpop.permute.xlu0 %374 }
 0x1e8   :  { %757 = vmatmul.mubr.msk.f32.gmra.mxu0 %vm219_vm2, %v949_v19  ;;  %v370_v30 = vpop.permute.xlu1 %369 }
 0x1e9   :  { %v365_v33 = vpop.permute.xlu0 %364 }
 0x1ec   :  { %v360_v35 = vpop.permute.xlu1 %359 }
 0x1ed   :  { %v530_v48 = vpop.permute.xlu0 %529 }
 0x1ee   :  { %v535_v49 = vrot.slane %v530_v48, %v534_v47 }
 0x29c   :  { %v749_v12 = vpop.f32.mrf.mxu0 }
 0x29d   :  { %v485_v34 = vadd.f32 %v749_v12, %v365_v33 }
 0x29e   :  { %v479_v13 = vpop.f32.mrf.mxu0 }
 0x29f   :  { %v480_v36 = vadd.f32 %v479_v13, %v360_v35 }
 0x2a0   :  { %v752_v15 = vpop.f32.mrf.mxu0 }
 0x2a1   :  { %v495_v31 = vadd.f32 %v752_v15, %v375_v28 }
 0x2a2   :  { %v489_v17 = vpop.f32.mrf.mxu0 }
 0x2a3   :  { %v490_v32 = vadd.f32 %v489_v17, %v370_v30 }
 0x2a4   :  { %v755_v18 = vpop.f32.mrf.mxu0 }
 0x2a5   :  { %v505_v27 = vadd.f32 %v755_v18, %v385_v22 }
 0x2a6   :  { %v499_v23 = vpop.f32.mrf.mxu0 }
 0x2a7   :  { %v500_v29 = vadd.f32 %v499_v23, %v380_v21 }
 0x2a8   :  { %v758_v24 = vpop.f32.mrf.mxu0 }
 0x2a9   :  { %v515_v25 = vadd.f32 %v758_v24, %v395_v14 }
 0x2aa   :  { %v509_v20 = vpop.f32.mrf.mxu0 }
 0x2ab   :  { %815 = vtanh.f32 %v515_v25  ;;  %v510_v19 = vadd.f32 %v509_v20, %v390_v16 }
 0x2ad   :  { %817 = vtanh.f32 %v510_v19 }
 0x2ae   :  { %819 = vtanh.f32 %v505_v27 }
 0x2af   :  { %821 = vtanh.f32 %v500_v29 }
 0x2b0   :  { %823 = vtanh.f32 %v495_v31 }
 0x2b1   :  { %825 = vtanh.f32 %v490_v32 }
 0x2b2   :  { %827 = vtanh.f32 %v485_v34 }
 0x2b3   :  { %829 = vtanh.f32 %v480_v36 }
 0x2b8   :  { %v816_v37 = vpop.eup %815 }
 0x2b9   :  { %760 = vmatpush3.msra.mxu1 %v816_v37 }
 0x2ba   :  { %v818_v38 = vpop.eup %817  ;;  %761 = vmatprep.subr.mxu1 %v832_v11 }
 0x2bb   :  { %762 = vmatpush3.msra.mxu1 %v818_v38  ;;  %v820_v39 = vpop.eup %819 }
 0x2bc   :  { %763 = vmatprep.subr.mxu1 %v832_v11  ;;  %v822_v40 = vpop.eup %821 }
 0x2bd   :  { %764 = vmatpush3.msra.mxu1 %v820_v39  ;;  %v824_v41 = vpop.eup %823 }
 0x2be   :  { %765 = vmatprep.subr.mxu1 %v832_v11  ;;  %v826_v42 = vpop.eup %825 }
 0x2bf   :  { %766 = vmatpush3.msra.mxu1 %v822_v40  ;;  %v828_v43 = vpop.eup %827 }
 0x2c0   :  { %767 = vmatprep.subr.mxu1 %v832_v11  ;;  %v830_v44 = vpop.eup %829 }
 0x2c1   :  { %768 = vmatpush3.msra.mxu1 %v824_v41 }
 0x2c2   :  { %769 = vmatprep.subr.mxu1 %v832_v11 }
 0x2c3   :  { %770 = vmatpush3.msra.mxu1 %v826_v42 }
 0x2c4   :  { %771 = vmatprep.subr.mxu1 %v832_v11 }
 0x2c5   :  { %772 = vmatpush3.msra.mxu1 %v828_v43 }
 0x2c6   :  { %773 = vmatprep.subr.mxu1 %v832_v11 }
 0x2c7   :  { %774 = vmatpush3.msra.mxu1 %v830_v44 }
 0x2c8   :  { %776 = vmatmul.mubr.msk.f32.vlgmr.msra.gmra.mxu1 %vm219_vm2, %v991_v26 }
 0x388   :  { %v604_v50 = vpop.f32.mrf.mxu1 }
 0x389   :  { %v605_v51 = vadd.f32 %v604_v50, %v535_v49 }
 0x38a   :  { %v777_v52 = vpop.f32.mrf.mxu1 }
 0x38b   :  { %608 = vst [vmem:[%s1031_s5] sm:$0x1] %v605_v51 }

</bundles_post_ra>
